<compile_context>
chip_gen: v7x
topology: tpu7x:2x2x1
jax: 0.10.0
libtpu: 0.0.40
codegen_flags: <defaults>
</compile_context>

<pallas_src>
import jax
import jax.numpy as jnp
from jax.experimental import pallas as pl
from jax.experimental.pallas import tpu as pltpu


NUM_HIDDEN_REPEATS = 9  # the `for i in range(9)` loop in SimpleNet.forward
LANE = 128              # TPU lane width
SUBLANE = 8             # f32 sublane count


def _cdiv(a, b):
    return -(-a // b)


def _round_up(n, m):
    return ((n + m - 1) // m) * m


def simplenet_kernel(x_ref, w_in_ref, b_in_ref, w_hid_ref, b_hid_ref,
                     w_out_ref, b_out_ref, o_ref):
    tb = x_ref.shape[0]
    bf16 = jnp.bfloat16

    # Two independent batch sub-chains, interleaved layer-by-layer, so the MXU
    # has independent pushes to hide result-FIFO drain of the serial 11-matmul
    # chain (v5e/v6e MRF). Sub-tiles stay sublane-aligned (half % 8 == 0).
    n_chains = 2 if (tb >= 16 and tb % 16 == 0) else 1
    half = tb // n_chains

    # Weights arrive pre-cast to bf16 and are resident across all grid steps.
    w_in = w_in_ref[...]
    w_hid = w_hid_ref[...]
    w_out = w_out_ref[...]
    # Biases stay f32 as single (1, h_pad) rows; the adds below broadcast along
    # sublanes -- no (tb, h_pad) splat is ever materialized.
    b_in = b_in_ref[...]
    b_hid = b_hid_ref[...]
    b_out = b_out_ref[...]

    def hidden_layer(h):
        y = jnp.dot(h.astype(bf16), w_hid, preferred_element_type=jnp.float32)
        return jnp.maximum(y + b_hid, 0.0)   # f32 epilogue (v5e-safe)

    # ---- fc_in + relu ----   (dropout: identity in eval mode)
    hs = []
    for c in range(n_chains):
        xc = x_ref[c * half:(c + 1) * half, :].astype(bf16)
        h = jnp.dot(xc, w_in, preferred_element_type=jnp.float32)
        hs.append(jnp.maximum(h + b_in, 0.0))

    # ---- 9x (fc_hidden + relu), shared weights ----
    # Static unrolled loop; the two chains are interleaved at every layer.
    for _ in range(NUM_HIDDEN_REPEATS):
        hs = [hidden_layer(h) for h in hs]
        # (dropout: identity in eval mode)

    # ---- fc_out + sigmoid ----
    for c in range(n_chains):
        logits = jnp.dot(hs[c].astype(bf16), w_out,
                         preferred_element_type=jnp.float32) + b_out
        o_ref[c * half:(c + 1) * half, :] = (
            jax.nn.sigmoid(logits).astype(o_ref.dtype))


def prepare_params(params):
    """Zero-pad feature dims (input -> multiple of 8, hidden/output -> multiple
    of 128 for lane-dense stores) and pre-cast weights to bf16. Exact: padded
    hidden units stay relu(0 + 0) = 0 at every stage, padded output columns are
    sliced away by the wrapper, and padded input columns multiply zero inputs."""
    in_dim = params["w_in"].shape[0]
    h = params["w_hid"].shape[0]
    o = params["w_out"].shape[1]
    in_pad = _round_up(in_dim, SUBLANE)
    h_pad = _round_up(h, LANE)
    o_pad = _round_up(o, LANE)

    def pad2(a, rows, cols):
        return jnp.pad(a, ((0, rows - a.shape[0]), (0, cols - a.shape[1])))

    return {
        "w_in":  pad2(params["w_in"],  in_pad, h_pad).astype(jnp.bfloat16),
        "b_in":  pad2(params["b_in"],  1, h_pad),
        "w_hid": pad2(params["w_hid"], h_pad, h_pad).astype(jnp.bfloat16),
        "b_hid": pad2(params["b_hid"], 1, h_pad),
        "w_out": pad2(params["w_out"], h_pad, o_pad).astype(jnp.bfloat16),
        "b_out": pad2(params["b_out"], 1, o_pad),
    }


def _choose_batch_tiling(B, *, tb_max, min_steps):
    """Pick (tb, b_pad) so that b_pad = k*tb >= B with at most one tile of
    over-padding, tb <= ~tb_max, tb a multiple of 16 (two sublane-aligned
    sub-chains), and at least `min_steps` grid steps."""
    n_steps = max(min_steps, _cdiv(B, tb_max))
    tb = _round_up(_cdiv(B, n_steps), 16)
    b_pad = _round_up(B, tb)
    return tb, b_pad


def simplenet_forward(x, padded, output_dim, *, tb_max=4096):
    """x: (B, input_dim) float32. padded: dict from prepare_params()."""
    B, input_dim = x.shape
    in_pad = padded["w_in"].shape[0]
    o_pad = padded["w_out"].shape[1]

    # Force >= 2 grid steps when B is large enough: keeps both v7x TensorCores
    # busy (dimension_semantics=("parallel",)) and lets the x/out BlockSpec
    # double-buffering overlap DMA with compute. For tiny B a single step
    # avoids pointless per-step (~0.35 us) overhead.
    min_steps = 2 if B >= 128 else 1
    tb, b_pad = _choose_batch_tiling(B, tb_max=tb_max, min_steps=min_steps)

    if b_pad != B or in_pad != input_dim:
        x = jnp.pad(x, ((0, b_pad - B), (0, in_pad - input_dim)))

    def resident(arr):
        # Full-array block with a constant index -> stays in VMEM across the
        # whole grid (weights/biases are tiny: <100 KiB total in bf16/f32).
        # TODO(synk): pipeline_mode=pl.Buffered(1) would drop the unused second
        # buffer for these never-refetched blocks; left at default for safety.
        return pl.BlockSpec(arr.shape, lambda i: (0, 0))

    out_padded = pl.pallas_call(
        simplenet_kernel,
        out_shape=jax.ShapeDtypeStruct((b_pad, o_pad), jnp.float32),
        grid=(b_pad // tb,),
        in_specs=[
            pl.BlockSpec((tb, in_pad), lambda i: (i, 0)),   # x: tiled on batch
            resident(padded["w_in"]),
            resident(padded["b_in"]),
            resident(padded["w_hid"]),
            resident(padded["b_hid"]),
            resident(padded["w_out"]),
            resident(padded["b_out"]),
        ],
        out_specs=pl.BlockSpec((tb, o_pad), lambda i: (i, 0)),
        compiler_params=pltpu.CompilerParams(
            dimension_semantics=("parallel",)),   # megacore sharding on v7x
    )(
        x,
        padded["w_in"], padded["b_in"],
        padded["w_hid"], padded["b_hid"],
        padded["w_out"], padded["b_out"],
    )
    return out_padded[:B, :output_dim]


def init_params(key, input_dim, hidden_dim, output_dim):
    """Deterministic init mimicking PyTorch nn.Linear default:
       U(-1/sqrt(fan_in), 1/sqrt(fan_in)). Weights stored as (in, out)."""
    def linear(k, fan_in, fan_out):
        kw, kb = jax.random.split(k)
        bound = 1.0 / jnp.sqrt(jnp.float32(fan_in))
        w = jax.random.uniform(kw, (fan_in, fan_out), jnp.float32, -bound, bound)
        b = jax.random.uniform(kb, (1, fan_out), jnp.float32, -bound, bound)
        return w, b

    k1, k2, k3 = jax.random.split(key, 3)
    w_in, b_in = linear(k1, input_dim, hidden_dim)
    w_hid, b_hid = linear(k2, hidden_dim, hidden_dim)
    w_out, b_out = linear(k3, hidden_dim, output_dim)
    return {
        "w_in": w_in, "b_in": b_in,
        "w_hid": w_hid, "b_hid": b_hid,
        "w_out": w_out, "b_out": b_out,
    }


def reference_forward_f32(x, params):
    """Pure-JAX full-f32 reference."""
    h = jnp.maximum(x @ params["w_in"] + params["b_in"], 0.0)
    for _ in range(NUM_HIDDEN_REPEATS):
        h = jnp.maximum(h @ params["w_hid"] + params["b_hid"], 0.0)
    return jax.nn.sigmoid(h @ params["w_out"] + params["b_out"])


def reference_forward_bf16(x, params):
    """Pure-JAX reference matching the kernel's precision
       (bf16 matmul inputs/weights, f32 accumulation + f32 epilogue)."""
    bf16 = jnp.bfloat16

    def mm(a, w):
        return jnp.dot(a.astype(bf16), w.astype(bf16),
                       preferred_element_type=jnp.float32)

    h = jnp.maximum(mm(x, params["w_in"]) + params["b_in"], 0.0)
    for _ in range(NUM_HIDDEN_REPEATS):
        h = jnp.maximum(mm(h, params["w_hid"]) + params["b_hid"], 0.0)
    return jax.nn.sigmoid(mm(h, params["w_out"]) + params["b_out"])


if __name__ == "__main__":
    # Moon Data: 2 input features, 1 sigmoid output. Small synthetic shapes.
    batch, input_dim, hidden_dim, output_dim = 8, 2, 32, 1

    key = jax.random.PRNGKey(0)
    k_params, k_x = jax.random.split(key)
    params = init_params(k_params, input_dim, hidden_dim, output_dim)
    x = jax.random.normal(k_x, (batch, input_dim), jnp.float32)

    padded = prepare_params(params)
    out = simplenet_forward(x, padded, output_dim)
    out = jax.block_until_ready(out)

    assert out.shape == (batch, output_dim)
    ref_bf16 = reference_forward_bf16(x, params)
    ref_f32 = reference_forward_f32(x, params)
    assert jnp.allclose(out, ref_bf16, atol=1e-4, rtol=1e-4), \
        "mismatch vs matched-precision (bf16 matmul) JAX reference"
    assert jnp.allclose(out, ref_f32, atol=5e-2, rtol=5e-2), \
        "mismatch vs full-f32 JAX reference"

    print("KERNEL_OK")
</pallas_src>

<mosaic_0001>
module attributes {stable_mosaic.version = 11 : i64} {
  func.func @simplenet_kernel(%arg0: i32, %arg1: memref<16x8xf32, #tpu.memory_space<vmem>>, %arg2: memref<8x128xbf16, #tpu.memory_space<vmem>>, %arg3: memref<1x128xf32, #tpu.memory_space<vmem>>, %arg4: memref<128x128xbf16, #tpu.memory_space<vmem>>, %arg5: memref<1x128xf32, #tpu.memory_space<vmem>>, %arg6: memref<128x128xbf16, #tpu.memory_space<vmem>>, %arg7: memref<1x128xf32, #tpu.memory_space<vmem>>, %arg8: memref<16x128xf32, #tpu.memory_space<vmem>>) attributes {dimension_semantics = [#tpu.dimension_semantics<parallel>], iteration_bounds = array<i64: 1>, scalar_prefetch = 0 : i64, scratch_operands = 0 : i64, tpu.core_type = #tpu.core_type<tc>, window_params = [{transform_indices = @transform_0, window_bounds = array<i64: 16, 8>}, {pipeline_mode = #tpu.pipeline_mode<synchronous>, transform_indices = @transform_1, window_bounds = array<i64: 8, 128>}, {pipeline_mode = #tpu.pipeline_mode<synchronous>, transform_indices = @transform_2, window_bounds = array<i64: 1, 128>}, {pipeline_mode = #tpu.pipeline_mode<synchronous>, transform_indices = @transform_3, window_bounds = array<i64: 128, 128>}, {pipeline_mode = #tpu.pipeline_mode<synchronous>, transform_indices = @transform_4, window_bounds = array<i64: 1, 128>}, {pipeline_mode = #tpu.pipeline_mode<synchronous>, transform_indices = @transform_5, window_bounds = array<i64: 128, 128>}, {pipeline_mode = #tpu.pipeline_mode<synchronous>, transform_indices = @transform_6, window_bounds = array<i64: 1, 128>}, {transform_indices = @transform_7, window_bounds = array<i64: 16, 128>}]} {
    %c0 = arith.constant 0 : index
    %c0_0 = arith.constant 0 : index
    %0 = vector.load %arg2[%c0, %c0_0] : memref<8x128xbf16, #tpu.memory_space<vmem>>, vector<8x128xbf16>
    %c0_1 = arith.constant 0 : index
    %c0_2 = arith.constant 0 : index
    %1 = vector.load %arg4[%c0_1, %c0_2] : memref<128x128xbf16, #tpu.memory_space<vmem>>, vector<128x128xbf16>
    %c0_3 = arith.constant 0 : index
    %c0_4 = arith.constant 0 : index
    %2 = vector.load %arg6[%c0_3, %c0_4] : memref<128x128xbf16, #tpu.memory_space<vmem>>, vector<128x128xbf16>
    %c0_5 = arith.constant 0 : index
    %c0_6 = arith.constant 0 : index
    %3 = vector.load %arg3[%c0_5, %c0_6] : memref<1x128xf32, #tpu.memory_space<vmem>>, vector<1x128xf32>
    %c0_7 = arith.constant 0 : index
    %c0_8 = arith.constant 0 : index
    %4 = vector.load %arg5[%c0_7, %c0_8] : memref<1x128xf32, #tpu.memory_space<vmem>>, vector<1x128xf32>
    %c0_9 = arith.constant 0 : index
    %c0_10 = arith.constant 0 : index
    %5 = vector.load %arg7[%c0_9, %c0_10] : memref<1x128xf32, #tpu.memory_space<vmem>>, vector<1x128xf32>
    %c0_11 = arith.constant 0 : index
    %c0_12 = arith.constant 0 : index
    %6 = vector.load %arg1[%c0_11, %c0_12] : memref<16x8xf32, #tpu.memory_space<vmem>>, vector<8x8xf32>
    %7 = arith.truncf %6 : vector<8x8xf32> to vector<8x8xbf16>
    %cst = arith.constant dense<0.000000e+00> : vector<8x128xf32>
    %8 = tpu.matmul %7, %0, %cst {dimension_numbers = #tpu.dot_dimension_numbers<[1], [0], [0], [1], [0, 0, 1, 1], [], []>} : vector<8x8xbf16>, vector<8x128xbf16>, vector<8x128xf32> -> vector<8x128xf32>
    %9 = vector.broadcast %3 : vector<1x128xf32> to vector<8x128xf32>
    %10 = arith.addf %8, %9 : vector<8x128xf32>
    %cst_13 = arith.constant 0.000000e+00 : f32
    %11 = vector.broadcast %cst_13 : f32 to vector<8x128xf32>
    %12 = arith.maximumf %10, %11 : vector<8x128xf32>
    %c8 = arith.constant 8 : index
    %c0_14 = arith.constant 0 : index
    %13 = vector.load %arg1[%c8, %c0_14] : memref<16x8xf32, #tpu.memory_space<vmem>>, vector<8x8xf32>
    %14 = arith.truncf %13 : vector<8x8xf32> to vector<8x8xbf16>
    %cst_15 = arith.constant dense<0.000000e+00> : vector<8x128xf32>
    %15 = tpu.matmul %14, %0, %cst_15 {dimension_numbers = #tpu.dot_dimension_numbers<[1], [0], [0], [1], [0, 0, 1, 1], [], []>} : vector<8x8xbf16>, vector<8x128xbf16>, vector<8x128xf32> -> vector<8x128xf32>
    %16 = vector.broadcast %3 : vector<1x128xf32> to vector<8x128xf32>
    %17 = arith.addf %15, %16 : vector<8x128xf32>
    %cst_16 = arith.constant 0.000000e+00 : f32
    %18 = vector.broadcast %cst_16 : f32 to vector<8x128xf32>
    %19 = arith.maximumf %17, %18 : vector<8x128xf32>
    %20 = arith.truncf %12 : vector<8x128xf32> to vector<8x128xbf16>
    %cst_17 = arith.constant dense<0.000000e+00> : vector<8x128xf32>
    %21 = tpu.matmul %20, %1, %cst_17 {dimension_numbers = #tpu.dot_dimension_numbers<[1], [0], [0], [1], [0, 0, 1, 1], [], []>} : vector<8x128xbf16>, vector<128x128xbf16>, vector<8x128xf32> -> vector<8x128xf32>
    %22 = vector.broadcast %4 : vector<1x128xf32> to vector<8x128xf32>
    %23 = arith.addf %21, %22 : vector<8x128xf32>
    %cst_18 = arith.constant 0.000000e+00 : f32
    %24 = vector.broadcast %cst_18 : f32 to vector<8x128xf32>
    %25 = arith.maximumf %23, %24 : vector<8x128xf32>
    %26 = arith.truncf %19 : vector<8x128xf32> to vector<8x128xbf16>
    %cst_19 = arith.constant dense<0.000000e+00> : vector<8x128xf32>
    %27 = tpu.matmul %26, %1, %cst_19 {dimension_numbers = #tpu.dot_dimension_numbers<[1], [0], [0], [1], [0, 0, 1, 1], [], []>} : vector<8x128xbf16>, vector<128x128xbf16>, vector<8x128xf32> -> vector<8x128xf32>
    %28 = vector.broadcast %4 : vector<1x128xf32> to vector<8x128xf32>
    %29 = arith.addf %27, %28 : vector<8x128xf32>
    %cst_20 = arith.constant 0.000000e+00 : f32
    %30 = vector.broadcast %cst_20 : f32 to vector<8x128xf32>
    %31 = arith.maximumf %29, %30 : vector<8x128xf32>
    %32 = arith.truncf %25 : vector<8x128xf32> to vector<8x128xbf16>
    %cst_21 = arith.constant dense<0.000000e+00> : vector<8x128xf32>
    %33 = tpu.matmul %32, %1, %cst_21 {dimension_numbers = #tpu.dot_dimension_numbers<[1], [0], [0], [1], [0, 0, 1, 1], [], []>} : vector<8x128xbf16>, vector<128x128xbf16>, vector<8x128xf32> -> vector<8x128xf32>
    %34 = vector.broadcast %4 : vector<1x128xf32> to vector<8x128xf32>
    %35 = arith.addf %33, %34 : vector<8x128xf32>
    %cst_22 = arith.constant 0.000000e+00 : f32
    %36 = vector.broadcast %cst_22 : f32 to vector<8x128xf32>
    %37 = arith.maximumf %35, %36 : vector<8x128xf32>
    %38 = arith.truncf %31 : vector<8x128xf32> to vector<8x128xbf16>
    %cst_23 = arith.constant dense<0.000000e+00> : vector<8x128xf32>
    %39 = tpu.matmul %38, %1, %cst_23 {dimension_numbers = #tpu.dot_dimension_numbers<[1], [0], [0], [1], [0, 0, 1, 1], [], []>} : vector<8x128xbf16>, vector<128x128xbf16>, vector<8x128xf32> -> vector<8x128xf32>
    %40 = vector.broadcast %4 : vector<1x128xf32> to vector<8x128xf32>
    %41 = arith.addf %39, %40 : vector<8x128xf32>
    %cst_24 = arith.constant 0.000000e+00 : f32
    %42 = vector.broadcast %cst_24 : f32 to vector<8x128xf32>
    %43 = arith.maximumf %41, %42 : vector<8x128xf32>
    %44 = arith.truncf %37 : vector<8x128xf32> to vector<8x128xbf16>
    %cst_25 = arith.constant dense<0.000000e+00> : vector<8x128xf32>
    %45 = tpu.matmul %44, %1, %cst_25 {dimension_numbers = #tpu.dot_dimension_numbers<[1], [0], [0], [1], [0, 0, 1, 1], [], []>} : vector<8x128xbf16>, vector<128x128xbf16>, vector<8x128xf32> -> vector<8x128xf32>
    %46 = vector.broadcast %4 : vector<1x128xf32> to vector<8x128xf32>
    %47 = arith.addf %45, %46 : vector<8x128xf32>
    %cst_26 = arith.constant 0.000000e+00 : f32
    %48 = vector.broadcast %cst_26 : f32 to vector<8x128xf32>
    %49 = arith.maximumf %47, %48 : vector<8x128xf32>
    %50 = arith.truncf %43 : vector<8x128xf32> to vector<8x128xbf16>
    %cst_27 = arith.constant dense<0.000000e+00> : vector<8x128xf32>
    %51 = tpu.matmul %50, %1, %cst_27 {dimension_numbers = #tpu.dot_dimension_numbers<[1], [0], [0], [1], [0, 0, 1, 1], [], []>} : vector<8x128xbf16>, vector<128x128xbf16>, vector<8x128xf32> -> vector<8x128xf32>
    %52 = vector.broadcast %4 : vector<1x128xf32> to vector<8x128xf32>
    %53 = arith.addf %51, %52 : vector<8x128xf32>
    %cst_28 = arith.constant 0.000000e+00 : f32
    %54 = vector.broadcast %cst_28 : f32 to vector<8x128xf32>
    %55 = arith.maximumf %53, %54 : vector<8x128xf32>
    %56 = arith.truncf %49 : vector<8x128xf32> to vector<8x128xbf16>
    %cst_29 = arith.constant dense<0.000000e+00> : vector<8x128xf32>
    %57 = tpu.matmul %56, %1, %cst_29 {dimension_numbers = #tpu.dot_dimension_numbers<[1], [0], [0], [1], [0, 0, 1, 1], [], []>} : vector<8x128xbf16>, vector<128x128xbf16>, vector<8x128xf32> -> vector<8x128xf32>
    %58 = vector.broadcast %4 : vector<1x128xf32> to vector<8x128xf32>
    %59 = arith.addf %57, %58 : vector<8x128xf32>
    %cst_30 = arith.constant 0.000000e+00 : f32
    %60 = vector.broadcast %cst_30 : f32 to vector<8x128xf32>
    %61 = arith.maximumf %59, %60 : vector<8x128xf32>
    %62 = arith.truncf %55 : vector<8x128xf32> to vector<8x128xbf16>
    %cst_31 = arith.constant dense<0.000000e+00> : vector<8x128xf32>
    %63 = tpu.matmul %62, %1, %cst_31 {dimension_numbers = #tpu.dot_dimension_numbers<[1], [0], [0], [1], [0, 0, 1, 1], [], []>} : vector<8x128xbf16>, vector<128x128xbf16>, vector<8x128xf32> -> vector<8x128xf32>
    %64 = vector.broadcast %4 : vector<1x128xf32> to vector<8x128xf32>
    %65 = arith.addf %63, %64 : vector<8x128xf32>
    %cst_32 = arith.constant 0.000000e+00 : f32
    %66 = vector.broadcast %cst_32 : f32 to vector<8x128xf32>
    %67 = arith.maximumf %65, %66 : vector<8x128xf32>
    %68 = arith.truncf %61 : vector<8x128xf32> to vector<8x128xbf16>
    %cst_33 = arith.constant dense<0.000000e+00> : vector<8x128xf32>
    %69 = tpu.matmul %68, %1, %cst_33 {dimension_numbers = #tpu.dot_dimension_numbers<[1], [0], [0], [1], [0, 0, 1, 1], [], []>} : vector<8x128xbf16>, vector<128x128xbf16>, vector<8x128xf32> -> vector<8x128xf32>
    %70 = vector.broadcast %4 : vector<1x128xf32> to vector<8x128xf32>
    %71 = arith.addf %69, %70 : vector<8x128xf32>
    %cst_34 = arith.constant 0.000000e+00 : f32
    %72 = vector.broadcast %cst_34 : f32 to vector<8x128xf32>
    %73 = arith.maximumf %71, %72 : vector<8x128xf32>
    %74 = arith.truncf %67 : vector<8x128xf32> to vector<8x128xbf16>
    %cst_35 = arith.constant dense<0.000000e+00> : vector<8x128xf32>
    %75 = tpu.matmul %74, %1, %cst_35 {dimension_numbers = #tpu.dot_dimension_numbers<[1], [0], [0], [1], [0, 0, 1, 1], [], []>} : vector<8x128xbf16>, vector<128x128xbf16>, vector<8x128xf32> -> vector<8x128xf32>
    %76 = vector.broadcast %4 : vector<1x128xf32> to vector<8x128xf32>
    %77 = arith.addf %75, %76 : vector<8x128xf32>
    %cst_36 = arith.constant 0.000000e+00 : f32
    %78 = vector.broadcast %cst_36 : f32 to vector<8x128xf32>
    %79 = arith.maximumf %77, %78 : vector<8x128xf32>
    %80 = arith.truncf %73 : vector<8x128xf32> to vector<8x128xbf16>
    %cst_37 = arith.constant dense<0.000000e+00> : vector<8x128xf32>
    %81 = tpu.matmul %80, %1, %cst_37 {dimension_numbers = #tpu.dot_dimension_numbers<[1], [0], [0], [1], [0, 0, 1, 1], [], []>} : vector<8x128xbf16>, vector<128x128xbf16>, vector<8x128xf32> -> vector<8x128xf32>
    %82 = vector.broadcast %4 : vector<1x128xf32> to vector<8x128xf32>
    %83 = arith.addf %81, %82 : vector<8x128xf32>
    %cst_38 = arith.constant 0.000000e+00 : f32
    %84 = vector.broadcast %cst_38 : f32 to vector<8x128xf32>
    %85 = arith.maximumf %83, %84 : vector<8x128xf32>
    %86 = arith.truncf %79 : vector<8x128xf32> to vector<8x128xbf16>
    %cst_39 = arith.constant dense<0.000000e+00> : vector<8x128xf32>
    %87 = tpu.matmul %86, %1, %cst_39 {dimension_numbers = #tpu.dot_dimension_numbers<[1], [0], [0], [1], [0, 0, 1, 1], [], []>} : vector<8x128xbf16>, vector<128x128xbf16>, vector<8x128xf32> -> vector<8x128xf32>
    %88 = vector.broadcast %4 : vector<1x128xf32> to vector<8x128xf32>
    %89 = arith.addf %87, %88 : vector<8x128xf32>
    %cst_40 = arith.constant 0.000000e+00 : f32
    %90 = vector.broadcast %cst_40 : f32 to vector<8x128xf32>
    %91 = arith.maximumf %89, %90 : vector<8x128xf32>
    %92 = arith.truncf %85 : vector<8x128xf32> to vector<8x128xbf16>
    %cst_41 = arith.constant dense<0.000000e+00> : vector<8x128xf32>
    %93 = tpu.matmul %92, %1, %cst_41 {dimension_numbers = #tpu.dot_dimension_numbers<[1], [0], [0], [1], [0, 0, 1, 1], [], []>} : vector<8x128xbf16>, vector<128x128xbf16>, vector<8x128xf32> -> vector<8x128xf32>
    %94 = vector.broadcast %4 : vector<1x128xf32> to vector<8x128xf32>
    %95 = arith.addf %93, %94 : vector<8x128xf32>
    %cst_42 = arith.constant 0.000000e+00 : f32
    %96 = vector.broadcast %cst_42 : f32 to vector<8x128xf32>
    %97 = arith.maximumf %95, %96 : vector<8x128xf32>
    %98 = arith.truncf %91 : vector<8x128xf32> to vector<8x128xbf16>
    %cst_43 = arith.constant dense<0.000000e+00> : vector<8x128xf32>
    %99 = tpu.matmul %98, %1, %cst_43 {dimension_numbers = #tpu.dot_dimension_numbers<[1], [0], [0], [1], [0, 0, 1, 1], [], []>} : vector<8x128xbf16>, vector<128x128xbf16>, vector<8x128xf32> -> vector<8x128xf32>
    %100 = vector.broadcast %4 : vector<1x128xf32> to vector<8x128xf32>
    %101 = arith.addf %99, %100 : vector<8x128xf32>
    %cst_44 = arith.constant 0.000000e+00 : f32
    %102 = vector.broadcast %cst_44 : f32 to vector<8x128xf32>
    %103 = arith.maximumf %101, %102 : vector<8x128xf32>
    %104 = arith.truncf %97 : vector<8x128xf32> to vector<8x128xbf16>
    %cst_45 = arith.constant dense<0.000000e+00> : vector<8x128xf32>
    %105 = tpu.matmul %104, %1, %cst_45 {dimension_numbers = #tpu.dot_dimension_numbers<[1], [0], [0], [1], [0, 0, 1, 1], [], []>} : vector<8x128xbf16>, vector<128x128xbf16>, vector<8x128xf32> -> vector<8x128xf32>
    %106 = vector.broadcast %4 : vector<1x128xf32> to vector<8x128xf32>
    %107 = arith.addf %105, %106 : vector<8x128xf32>
    %cst_46 = arith.constant 0.000000e+00 : f32
    %108 = vector.broadcast %cst_46 : f32 to vector<8x128xf32>
    %109 = arith.maximumf %107, %108 : vector<8x128xf32>
    %110 = arith.truncf %103 : vector<8x128xf32> to vector<8x128xbf16>
    %cst_47 = arith.constant dense<0.000000e+00> : vector<8x128xf32>
    %111 = tpu.matmul %110, %1, %cst_47 {dimension_numbers = #tpu.dot_dimension_numbers<[1], [0], [0], [1], [0, 0, 1, 1], [], []>} : vector<8x128xbf16>, vector<128x128xbf16>, vector<8x128xf32> -> vector<8x128xf32>
    %112 = vector.broadcast %4 : vector<1x128xf32> to vector<8x128xf32>
    %113 = arith.addf %111, %112 : vector<8x128xf32>
    %cst_48 = arith.constant 0.000000e+00 : f32
    %114 = vector.broadcast %cst_48 : f32 to vector<8x128xf32>
    %115 = arith.maximumf %113, %114 : vector<8x128xf32>
    %116 = arith.truncf %109 : vector<8x128xf32> to vector<8x128xbf16>
    %cst_49 = arith.constant dense<0.000000e+00> : vector<8x128xf32>
    %117 = tpu.matmul %116, %1, %cst_49 {dimension_numbers = #tpu.dot_dimension_numbers<[1], [0], [0], [1], [0, 0, 1, 1], [], []>} : vector<8x128xbf16>, vector<128x128xbf16>, vector<8x128xf32> -> vector<8x128xf32>
    %118 = vector.broadcast %4 : vector<1x128xf32> to vector<8x128xf32>
    %119 = arith.addf %117, %118 : vector<8x128xf32>
    %cst_50 = arith.constant 0.000000e+00 : f32
    %120 = vector.broadcast %cst_50 : f32 to vector<8x128xf32>
    %121 = arith.maximumf %119, %120 : vector<8x128xf32>
    %122 = arith.truncf %115 : vector<8x128xf32> to vector<8x128xbf16>
    %cst_51 = arith.constant dense<0.000000e+00> : vector<8x128xf32>
    %123 = tpu.matmul %122, %1, %cst_51 {dimension_numbers = #tpu.dot_dimension_numbers<[1], [0], [0], [1], [0, 0, 1, 1], [], []>} : vector<8x128xbf16>, vector<128x128xbf16>, vector<8x128xf32> -> vector<8x128xf32>
    %124 = vector.broadcast %4 : vector<1x128xf32> to vector<8x128xf32>
    %125 = arith.addf %123, %124 : vector<8x128xf32>
    %cst_52 = arith.constant 0.000000e+00 : f32
    %126 = vector.broadcast %cst_52 : f32 to vector<8x128xf32>
    %127 = arith.maximumf %125, %126 : vector<8x128xf32>
    %128 = arith.truncf %121 : vector<8x128xf32> to vector<8x128xbf16>
    %cst_53 = arith.constant dense<0.000000e+00> : vector<8x128xf32>
    %129 = tpu.matmul %128, %2, %cst_53 {dimension_numbers = #tpu.dot_dimension_numbers<[1], [0], [0], [1], [0, 0, 1, 1], [], []>} : vector<8x128xbf16>, vector<128x128xbf16>, vector<8x128xf32> -> vector<8x128xf32>
    %130 = vector.broadcast %5 : vector<1x128xf32> to vector<8x128xf32>
    %131 = arith.addf %129, %130 : vector<8x128xf32>
    %132 = arith.negf %131 : vector<8x128xf32>
    %133 = math.exp %132 : vector<8x128xf32>
    %cst_54 = arith.constant 1.000000e+00 : f32
    %134 = vector.broadcast %cst_54 : f32 to vector<8x128xf32>
    %135 = arith.addf %134, %133 : vector<8x128xf32>
    %136 = arith.divf %134, %135 : vector<8x128xf32>
    %c0_55 = arith.constant 0 : index
    %c0_56 = arith.constant 0 : index
    %137 = vector.load %arg8[%c0_55, %c0_56] : memref<16x128xf32, #tpu.memory_space<vmem>>, vector<8x128xf32>
    tpu.vector_store %arg8[%c0_55, %c0_56], %136 {strides = array<i32>} : memref<16x128xf32, #tpu.memory_space<vmem>>, vector<8x128xf32>,
    %138 = arith.truncf %127 : vector<8x128xf32> to vector<8x128xbf16>
    %cst_57 = arith.constant dense<0.000000e+00> : vector<8x128xf32>
    %139 = tpu.matmul %138, %2, %cst_57 {dimension_numbers = #tpu.dot_dimension_numbers<[1], [0], [0], [1], [0, 0, 1, 1], [], []>} : vector<8x128xbf16>, vector<128x128xbf16>, vector<8x128xf32> -> vector<8x128xf32>
    %140 = vector.broadcast %5 : vector<1x128xf32> to vector<8x128xf32>
    %141 = arith.addf %139, %140 : vector<8x128xf32>
    %142 = arith.negf %141 : vector<8x128xf32>
    %143 = math.exp %142 : vector<8x128xf32>
    %cst_58 = arith.constant 1.000000e+00 : f32
    %144 = vector.broadcast %cst_58 : f32 to vector<8x128xf32>
    %145 = arith.addf %144, %143 : vector<8x128xf32>
    %146 = arith.divf %144, %145 : vector<8x128xf32>
    %c8_59 = arith.constant 8 : index
    %c0_60 = arith.constant 0 : index
    %147 = vector.load %arg8[%c8_59, %c0_60] : memref<16x128xf32, #tpu.memory_space<vmem>>, vector<8x128xf32>
    tpu.vector_store %arg8[%c8_59, %c0_60], %146 {strides = array<i32>} : memref<16x128xf32, #tpu.memory_space<vmem>>, vector<8x128xf32>,
    return
  }
  func.func @transform_0(%arg0: i32) -> (i32, i32) {
    %c0_i32 = arith.constant 0 : i32
    %c0_i32_0 = arith.constant 0 : i32
    return %arg0, %c0_i32 : i32, i32
  }
  func.func @transform_1(%arg0: i32) -> (i32, i32) {
    %c0_i32 = arith.constant 0 : i32
    %c0_i32_0 = arith.constant 0 : i32
    %c0_i32_1 = arith.constant 0 : i32
    return %c0_i32, %c0_i32_0 : i32, i32
  }
  func.func @transform_2(%arg0: i32) -> (i32, i32) {
    %c0_i32 = arith.constant 0 : i32
    %c0_i32_0 = arith.constant 0 : i32
    %c0_i32_1 = arith.constant 0 : i32
    return %c0_i32, %c0_i32_0 : i32, i32
  }
  func.func @transform_3(%arg0: i32) -> (i32, i32) {
    %c0_i32 = arith.constant 0 : i32
    %c0_i32_0 = arith.constant 0 : i32
    %c0_i32_1 = arith.constant 0 : i32
    return %c0_i32, %c0_i32_0 : i32, i32
  }
  func.func @transform_4(%arg0: i32) -> (i32, i32) {
    %c0_i32 = arith.constant 0 : i32
    %c0_i32_0 = arith.constant 0 : i32
    %c0_i32_1 = arith.constant 0 : i32
    return %c0_i32, %c0_i32_0 : i32, i32
  }
  func.func @transform_5(%arg0: i32) -> (i32, i32) {
    %c0_i32 = arith.constant 0 : i32
    %c0_i32_0 = arith.constant 0 : i32
    %c0_i32_1 = arith.constant 0 : i32
    return %c0_i32, %c0_i32_0 : i32, i32
  }
  func.func @transform_6(%arg0: i32) -> (i32, i32) {
    %c0_i32 = arith.constant 0 : i32
    %c0_i32_0 = arith.constant 0 : i32
    %c0_i32_1 = arith.constant 0 : i32
    return %c0_i32, %c0_i32_0 : i32, i32
  }
  func.func @transform_7(%arg0: i32) -> (i32, i32) {
    %c0_i32 = arith.constant 0 : i32
    %c0_i32_0 = arith.constant 0 : i32
    return %arg0, %c0_i32 : i32, i32
  }
}

</mosaic_0001>

<bundles_post_ra>
// kernel: tpu_custom_call.1
= control target key start
LH: loop header
LB: loop body
LE: loop exit
PB: predicated region body
PF: predicated region fallthrough
CT: control target
= control target key end

     0   :  { %12 = vsyncpa [#allocation3], 0  ;;  %s2386_s0 = inlined_call_operand.vmem [shape: f32[16,8], index: 0, kind: input, shape index: {}]   ;;  %s2387_s1 = inlined_call_operand.vmem [shape: bf16[8,128], index: 1, kind: input, shape index: {}]   ;;  %s2388_s2 = inlined_call_operand.vmem [shape: f32[1,128], index: 2, kind: input, shape index: {}]   ;;  %s2389_s3 = inlined_call_operand.hbm [shape: bf16[128,128], index: 3, kind: input, shape index: {}]   ;;  %s2390_s4 = inlined_call_operand.vmem [shape: f32[1,128], index: 4, kind: input, shape index: {}]   ;;  %s2391_s5 = inlined_call_operand.hbm [shape: bf16[128,128], index: 5, kind: input, shape index: {}]   ;;  %s2392_s6 = inlined_call_operand.vmem [shape: f32[1,128], index: 6, kind: input, shape index: {}]   ;;  %s2393_s7 = inlined_call_operand.hbm [shape: f32[16,128], index: 7, kind: output, shape index: {}]  }
   0x1   :  { %13 = vsyncpa [#allocation6], 0 }
   0x2   :  { %14 = vsyncpa [#allocation4], 0  ;;  %s1897_s24 = smov [#allocation2]   ;;  %s1825_s28 = scalar_lea.hbm %s2389_s3, 1024 }
   0x3   :  { %s26_s25 = sshll.u32 %s1897_s24, 4  ;;  %p1826_p0 = scmp.ne.s32.totalorder %s2389_s3, %s1825_s28  ;;  %s27_s25 = int_to_ptr.vmem [resolvable:$true] %s26_s25 }
   0x4   :  { %p1829_p1 = scmp.lt.u32.totalorder %s1825_s28, %s2389_s3 }
   0x6   :  { %p1831_p2 = pnand %p1829_p1, %p1826_p0 }
   0x8   :  { %1834 = shalt.err (!%p1831_p2)
}
   0x9   :  { %s1835_s10 = scalar_lea.vmem %s27_s25, 1024  ;;  %p1840_p4 = scmp.lt.s32.totalorder %s27_s25, %s27_s25 }
   0xa   :  { %p1836_p3 = scmp.ne.s32.totalorder %s27_s25, %s1835_s10  ;;  %p1841_p5 = scmp.lt.s32.totalorder %s1835_s10, %s1835_s10 }
   0xc   :  { %p1842_p6 = por %p1841_p5, %p1840_p4 }
   0xe   :  { %p1843_p7 = pnand %p1842_p6, %p1836_p3 }
  0x10   :  { %1846 = shalt.err (!%p1843_p7)
}
  0x11   :  { %s1898_s11 = smov 64   ;;  %s1899_s12 = smov 4  }
  0x12   :  { %32 = dma.hbm_to_vmem [thread:$0]  %s2389_s3, 1024, %s27_s25, [#allocation3], %s1898_s11, %s1898_s11, %s1899_s12  }
  0x13   :  { %s1900_s15 = smov [#allocation5]   ;;  %s1847_s19 = scalar_lea.hbm %s2391_s5, 1024 }
  0x14   :  { %s40_s16 = sshll.u32 %s1900_s15, 4  ;;  %p1848_p8 = scmp.ne.s32.totalorder %s2391_s5, %s1847_s19  ;;  %s41_s16 = int_to_ptr.vmem [resolvable:$true] %s40_s16 }
  0x15   :  { %p1851_p9 = scmp.lt.u32.totalorder %s1847_s19, %s2391_s5 }
  0x17   :  { %p1853_p10 = pnand %p1851_p9, %p1848_p8 }
  0x19   :  { %1856 = shalt.err (!%p1853_p10)
}
  0x1a   :  { %s1857_s24 = scalar_lea.vmem %s41_s16, 1024  ;;  %p1862_p12 = scmp.lt.s32.totalorder %s41_s16, %s41_s16 }
  0x1b   :  { %p1858_p11 = scmp.ne.s32.totalorder %s41_s16, %s1857_s24  ;;  %p1863_p13 = scmp.lt.s32.totalorder %s1857_s24, %s1857_s24 }
  0x1d   :  { %p1864_p0 = por %p1863_p13, %p1862_p12 }
  0x1f   :  { %p1865_p1 = pnand %p1864_p0, %p1858_p11 }
  0x21   :  { %1868 = shalt.err (!%p1865_p1)
}
  0x22   :  { %46 = dma.hbm_to_vmem [thread:$0]  %s2391_s5, 1024, %s41_s16, [#allocation6], %s1898_s11, %s1898_s11, %s1899_s12  }
  0x23   :  { %1891 = dma.done.wait [#allocation3], 1024  }
  0x24   :  { %1892 = vsyncadd [#allocation3], 4294966272 }
  0x25   :  { %1893 = dma.done.wait [#allocation6], 1024  }
  0x26   :  { %1894 = vsyncadd [#allocation6], 4294966272  ;;  %v1901_v0 = vmov 0.0   ;;  %vm1902_vm0 = vmmov 0   ;;  %vm104_vm1 = vcmask 1043456   ;;  %v92_v2 = vld [vmem:[%s2386_s0] sm:$0xff] }
  0x27   :  { %1380 = vmatprep.subr.bf16.mxu0 %v1901_v0  ;;  %1386 = vmatprep.subr.bf16.mxu1 %v1901_v0  ;;  %v56_v1 = vld [vmem:[%s2387_s1] sm:$0xf]  ;;  %v149_v3 = vld [vmem:[%s2386_s0 + $0x8] sm:$0xff]  ;;  %v93_v5 = vpack.c.bf16 %v92_v2, %v92_v2  ;;  %vm100_vm2 = vcmask 64512   ;;  %v1995_v9 = vld [vmem:[#allocation2 + $0x10] sm:$0xff]  }
  0x28   :  { %1382 = vmatprep.mubr.msk.bf16.mxu0 %vm1902_vm0, %v1901_v0  ;;  %1388 = vmatprep.mubr.msk.bf16.mxu1 %vm1902_vm0, %v1901_v0  ;;  %v106_v4 = vsel %vm104_vm1, %v56_v1, 0  ;;  %v150_v6 = vpack.c.bf16 %v149_v3, %v149_v3  ;;  %v1985_v7 = vld [vmem:[#allocation2] sm:$0xff]   ;;  %v1991_v8 = vld [vmem:[#allocation2 + $0x8] sm:$0xff]   ;;  %v2007_v10 = vld [vmem:[#allocation2 + $0x18] sm:$0xff]  }
  0x29   :  { %1381 = vmatpush3.bf16.msra.mxu0 %v106_v4  ;;  %1387 = vmatpush3.bf16.msra.mxu1 %v106_v4  ;;  %v2013_v11 = vld [vmem:[#allocation2 + $0x20] sm:$0xff]   ;;  %v2019_v12 = vld [vmem:[#allocation2 + $0x28] sm:$0xff]   ;;  %v2027_v13 = vld [vmem:[#allocation2 + $0x30] sm:$0xff]  }
  0x2a   :  { %1392 = vmatprep.subr.bf16.mxu0 %v1901_v0  ;;  %1412 = vmatprep.subr.bf16.mxu1 %v1901_v0  ;;  %v2033_v14 = vld [vmem:[#allocation2 + $0x38] sm:$0xff]   ;;  %v1173_v15 = vld [vmem:[%s2388_s2] ss:$0 sm:$0xff] }
  0x2b   :  { %v2081_v30 = vld [vmem:[%s2390_s4] ss:$0 sm:$0xff] }
  0x2c   :  { %1383 = vmatmul.mubr.msk.bf16.vlgmr.msra.gmra.mrb[0].mxu0 %vm100_vm2, %v93_v5  ;;  %1389 = vmatmul.mubr.msk.bf16.vlgmr.msra.gmra.mrb[0].mxu1 %vm100_vm2, %v150_v6 }
  0x2d   :  { %1393 = vmatpush3.bf16.msra.mxu0 %v1985_v7  ;;  %1413 = vmatpush3.bf16.msra.mxu1 %v1985_v7 }
  0x2e   :  { %1394 = vmatprep.subr.bf16.mxu0 %v1901_v0  ;;  %1414 = vmatprep.subr.bf16.mxu1 %v1901_v0 }
  0x2f   :  { %1408 = vmatprep.mubr.msk.bf16.mxu0 %vm1902_vm0, %v1901_v0  ;;  %1428 = vmatprep.mubr.msk.bf16.mxu1 %vm1902_vm0, %v1901_v0 }
  0x31   :  { %1395 = vmatpush3.bf16.msra.mxu0 %v1991_v8  ;;  %1415 = vmatpush3.bf16.msra.mxu1 %v1991_v8 }
  0x32   :  { %1396 = vmatprep.subr.bf16.mxu0 %v1901_v0  ;;  %1416 = vmatprep.subr.bf16.mxu1 %v1901_v0 }
  0x35   :  { %1397 = vmatpush3.bf16.msra.mxu0 %v1995_v9  ;;  %1417 = vmatpush3.bf16.msra.mxu1 %v1995_v9 }
  0x36   :  { %1398 = vmatprep.subr.bf16.mxu0 %v1901_v0  ;;  %1418 = vmatprep.subr.bf16.mxu1 %v1901_v0 }
  0x39   :  { %1399 = vmatpush3.bf16.msra.mxu0 %v2007_v10  ;;  %1419 = vmatpush3.bf16.msra.mxu1 %v2007_v10 }
  0x3a   :  { %1400 = vmatprep.subr.bf16.mxu0 %v1901_v0  ;;  %1420 = vmatprep.subr.bf16.mxu1 %v1901_v0 }
  0x3d   :  { %1401 = vmatpush3.bf16.msra.mxu0 %v2013_v11  ;;  %1421 = vmatpush3.bf16.msra.mxu1 %v2013_v11 }
  0x3e   :  { %1402 = vmatprep.subr.bf16.mxu0 %v1901_v0  ;;  %1422 = vmatprep.subr.bf16.mxu1 %v1901_v0 }
  0x41   :  { %1403 = vmatpush3.bf16.msra.mxu0 %v2019_v12  ;;  %1423 = vmatpush3.bf16.msra.mxu1 %v2019_v12 }
  0x42   :  { %1404 = vmatprep.subr.bf16.mxu0 %v1901_v0  ;;  %1424 = vmatprep.subr.bf16.mxu1 %v1901_v0 }
  0x45   :  { %1405 = vmatpush3.bf16.msra.mxu0 %v2027_v13  ;;  %1425 = vmatpush3.bf16.msra.mxu1 %v2027_v13 }
  0x46   :  { %1406 = vmatprep.subr.bf16.mxu0 %v1901_v0  ;;  %1426 = vmatprep.subr.bf16.mxu1 %v1901_v0 }
  0x49   :  { %1407 = vmatpush3.bf16.msra.mxu0 %v2033_v14  ;;  %1427 = vmatpush3.bf16.msra.mxu1 %v2033_v14 }
  0x4a   :  { %1432 = vmatprep.subr.bf16.mxu0 %v1901_v0  ;;  %1452 = vmatprep.subr.bf16.mxu1 %v1901_v0 }
  0xff   :  { %v142_v16 = vpop.f32.mrb[0].mxu0  ;;  %v188_v17 = vpop.f32.mrb[0].mxu1 }
 0x100   :  { %v143_v18 = vadd.f32 %v1173_v15, %v142_v16  ;;  %v189_v19 = vadd.f32 %v1173_v15, %v188_v17  ;;  %v1384_v20 = vpop.f32.mrb[1].mxu0  ;;  %v1390_v21 = vpop.f32.mrb[1].mxu1 }
 0x101   :  { %v145_v22 = vpop.f32.mrb[2].mxu0  ;;  %v191_v23 = vpop.f32.mrb[2].mxu1 }
 0x102   :  { %v148_v24 = vmax.f32 %v143_v18, 0.0  ;;  %v194_v25 = vmax.f32 %v189_v19, 0.0  ;;  %v1385_v26 = vpop.f32.mrb[3].mxu0  ;;  %v1391_v27 = vpop.f32.mrb[3].mxu1 }
 0x104   :  { %v195_v28 = vpack.c.bf16 %v148_v24, %v148_v24  ;;  %v291_v29 = vpack.c.bf16 %v194_v25, %v194_v25 }
 0x106   :  { %1409 = vmatmul.mubr.bf16.vlgmr.msra.gmra.mrb[4].mxu0 %v195_v28  ;;  %1429 = vmatmul.mubr.bf16.vlgmr.msra.gmra.mrb[4].mxu1 %v291_v29 }
 0x107   :  { %1433 = vmatpush3.bf16.msra.mxu0 %v1985_v7  ;;  %1453 = vmatpush3.bf16.msra.mxu1 %v1985_v7 }
 0x108   :  { %1434 = vmatprep.subr.bf16.mxu0 %v1901_v0  ;;  %1454 = vmatprep.subr.bf16.mxu1 %v1901_v0 }
 0x109   :  { %1448 = vmatprep.mubr.msk.bf16.mxu0 %vm1902_vm0, %v1901_v0  ;;  %1468 = vmatprep.mubr.msk.bf16.mxu1 %vm1902_vm0, %v1901_v0 }
 0x10b   :  { %1435 = vmatpush3.bf16.msra.mxu0 %v1991_v8  ;;  %1455 = vmatpush3.bf16.msra.mxu1 %v1991_v8 }
 0x10c   :  { %1436 = vmatprep.subr.bf16.mxu0 %v1901_v0  ;;  %1456 = vmatprep.subr.bf16.mxu1 %v1901_v0 }
 0x10f   :  { %1437 = vmatpush3.bf16.msra.mxu0 %v1995_v9  ;;  %1457 = vmatpush3.bf16.msra.mxu1 %v1995_v9 }
 0x110   :  { %1438 = vmatprep.subr.bf16.mxu0 %v1901_v0  ;;  %1458 = vmatprep.subr.bf16.mxu1 %v1901_v0 }
 0x113   :  { %1439 = vmatpush3.bf16.msra.mxu0 %v2007_v10  ;;  %1459 = vmatpush3.bf16.msra.mxu1 %v2007_v10 }
 0x114   :  { %1440 = vmatprep.subr.bf16.mxu0 %v1901_v0  ;;  %1460 = vmatprep.subr.bf16.mxu1 %v1901_v0 }
 0x117   :  { %1441 = vmatpush3.bf16.msra.mxu0 %v2013_v11  ;;  %1461 = vmatpush3.bf16.msra.mxu1 %v2013_v11 }
 0x118   :  { %1442 = vmatprep.subr.bf16.mxu0 %v1901_v0  ;;  %1462 = vmatprep.subr.bf16.mxu1 %v1901_v0 }
 0x11b   :  { %1443 = vmatpush3.bf16.msra.mxu0 %v2019_v12  ;;  %1463 = vmatpush3.bf16.msra.mxu1 %v2019_v12 }
 0x11c   :  { %1444 = vmatprep.subr.bf16.mxu0 %v1901_v0  ;;  %1464 = vmatprep.subr.bf16.mxu1 %v1901_v0 }
 0x11f   :  { %1445 = vmatpush3.bf16.msra.mxu0 %v2027_v13  ;;  %1465 = vmatpush3.bf16.msra.mxu1 %v2027_v13 }
 0x120   :  { %1446 = vmatprep.subr.bf16.mxu0 %v1901_v0  ;;  %1466 = vmatprep.subr.bf16.mxu1 %v1901_v0 }
 0x123   :  { %1447 = vmatpush3.bf16.msra.mxu0 %v2033_v14  ;;  %1467 = vmatpush3.bf16.msra.mxu1 %v2033_v14 }
 0x124   :  { %1472 = vmatprep.subr.bf16.mxu0 %v1901_v0  ;;  %1492 = vmatprep.subr.bf16.mxu1 %v1901_v0 }
 0x1d9   :  { %v284_v31 = vpop.f32.mrb[4].mxu0  ;;  %v326_v32 = vpop.f32.mrb[4].mxu1 }
 0x1da   :  { %v285_v33 = vadd.f32 %v2081_v30, %v284_v31  ;;  %v327_v34 = vadd.f32 %v2081_v30, %v326_v32  ;;  %v1410_v35 = vpop.f32.mrb[5].mxu0  ;;  %v1430_v36 = vpop.f32.mrb[5].mxu1 }
 0x1db   :  { %v287_v37 = vpop.f32.mrb[6].mxu0  ;;  %v329_v38 = vpop.f32.mrb[6].mxu1 }
 0x1dc   :  { %v290_v39 = vmax.f32 %v285_v33, 0.0  ;;  %v332_v40 = vmax.f32 %v327_v34, 0.0  ;;  %v1411_v41 = vpop.f32.mrb[7].mxu0  ;;  %v1431_v42 = vpop.f32.mrb[7].mxu1 }
 0x1de   :  { %v333_v43 = vpack.c.bf16 %v290_v39, %v290_v39  ;;  %v375_v44 = vpack.c.bf16 %v332_v40, %v332_v40 }
 0x1e0   :  { %1449 = vmatmul.mubr.bf16.vlgmr.msra.gmra.mrb[8].mxu0 %v333_v43  ;;  %1469 = vmatmul.mubr.bf16.vlgmr.msra.gmra.mrb[8].mxu1 %v375_v44 }
 0x1e1   :  { %1473 = vmatpush3.bf16.msra.mxu0 %v1985_v7  ;;  %1493 = vmatpush3.bf16.msra.mxu1 %v1985_v7 }
 0x1e2   :  { %1474 = vmatprep.subr.bf16.mxu0 %v1901_v0  ;;  %1494 = vmatprep.subr.bf16.mxu1 %v1901_v0 }
 0x1e3   :  { %1488 = vmatprep.mubr.msk.bf16.mxu0 %vm1902_vm0, %v1901_v0  ;;  %1508 = vmatprep.mubr.msk.bf16.mxu1 %vm1902_vm0, %v1901_v0 }
 0x1e5   :  { %1475 = vmatpush3.bf16.msra.mxu0 %v1991_v8  ;;  %1495 = vmatpush3.bf16.msra.mxu1 %v1991_v8 }
 0x1e6   :  { %1476 = vmatprep.subr.bf16.mxu0 %v1901_v0  ;;  %1496 = vmatprep.subr.bf16.mxu1 %v1901_v0 }
 0x1e9   :  { %1477 = vmatpush3.bf16.msra.mxu0 %v1995_v9  ;;  %1497 = vmatpush3.bf16.msra.mxu1 %v1995_v9 }
 0x1ea   :  { %1478 = vmatprep.subr.bf16.mxu0 %v1901_v0  ;;  %1498 = vmatprep.subr.bf16.mxu1 %v1901_v0 }
 0x1ed   :  { %1479 = vmatpush3.bf16.msra.mxu0 %v2007_v10  ;;  %1499 = vmatpush3.bf16.msra.mxu1 %v2007_v10 }
 0x1ee   :  { %1480 = vmatprep.subr.bf16.mxu0 %v1901_v0  ;;  %1500 = vmatprep.subr.bf16.mxu1 %v1901_v0 }
 0x1f1   :  { %1481 = vmatpush3.bf16.msra.mxu0 %v2013_v11  ;;  %1501 = vmatpush3.bf16.msra.mxu1 %v2013_v11 }
 0x1f2   :  { %1482 = vmatprep.subr.bf16.mxu0 %v1901_v0  ;;  %1502 = vmatprep.subr.bf16.mxu1 %v1901_v0 }
 0x1f5   :  { %1483 = vmatpush3.bf16.msra.mxu0 %v2019_v12  ;;  %1503 = vmatpush3.bf16.msra.mxu1 %v2019_v12 }
 0x1f6   :  { %1484 = vmatprep.subr.bf16.mxu0 %v1901_v0  ;;  %1504 = vmatprep.subr.bf16.mxu1 %v1901_v0 }
 0x1f9   :  { %1485 = vmatpush3.bf16.msra.mxu0 %v2027_v13  ;;  %1505 = vmatpush3.bf16.msra.mxu1 %v2027_v13 }
 0x1fa   :  { %1486 = vmatprep.subr.bf16.mxu0 %v1901_v0  ;;  %1506 = vmatprep.subr.bf16.mxu1 %v1901_v0 }
 0x1fd   :  { %1487 = vmatpush3.bf16.msra.mxu0 %v2033_v14  ;;  %1507 = vmatpush3.bf16.msra.mxu1 %v2033_v14 }
 0x1fe   :  { %1512 = vmatprep.subr.bf16.mxu0 %v1901_v0  ;;  %1532 = vmatprep.subr.bf16.mxu1 %v1901_v0 }
 0x2b3   :  { %v368_v45 = vpop.f32.mrb[8].mxu0  ;;  %v410_v46 = vpop.f32.mrb[8].mxu1 }
 0x2b4   :  { %v369_v47 = vadd.f32 %v2081_v30, %v368_v45  ;;  %v411_v48 = vadd.f32 %v2081_v30, %v410_v46  ;;  %v1450_v49 = vpop.f32.mrb[9].mxu0  ;;  %v1470_v50 = vpop.f32.mrb[9].mxu1 }
 0x2b5   :  { %v371_v51 = vpop.f32.mrb[10].mxu0  ;;  %v413_v52 = vpop.f32.mrb[10].mxu1 }
 0x2b6   :  { %v374_v53 = vmax.f32 %v369_v47, 0.0  ;;  %v416_v54 = vmax.f32 %v411_v48, 0.0  ;;  %v1451_v55 = vpop.f32.mrb[11].mxu0  ;;  %v1471_v56 = vpop.f32.mrb[11].mxu1 }
 0x2b8   :  { %v417_v57 = vpack.c.bf16 %v374_v53, %v374_v53  ;;  %v459_v58 = vpack.c.bf16 %v416_v54, %v416_v54 }
 0x2ba   :  { %1489 = vmatmul.mubr.bf16.vlgmr.msra.gmra.mrb[12].mxu0 %v417_v57  ;;  %1509 = vmatmul.mubr.bf16.vlgmr.msra.gmra.mrb[12].mxu1 %v459_v58 }
 0x2bb   :  { %1513 = vmatpush3.bf16.msra.mxu0 %v1985_v7  ;;  %1533 = vmatpush3.bf16.msra.mxu1 %v1985_v7 }
 0x2bc   :  { %1514 = vmatprep.subr.bf16.mxu0 %v1901_v0  ;;  %1534 = vmatprep.subr.bf16.mxu1 %v1901_v0 }
 0x2bd   :  { %1528 = vmatprep.mubr.msk.bf16.mxu0 %vm1902_vm0, %v1901_v0  ;;  %1548 = vmatprep.mubr.msk.bf16.mxu1 %vm1902_vm0, %v1901_v0 }
 0x2bf   :  { %1515 = vmatpush3.bf16.msra.mxu0 %v1991_v8  ;;  %1535 = vmatpush3.bf16.msra.mxu1 %v1991_v8 }
 0x2c0   :  { %1516 = vmatprep.subr.bf16.mxu0 %v1901_v0  ;;  %1536 = vmatprep.subr.bf16.mxu1 %v1901_v0 }
 0x2c3   :  { %1517 = vmatpush3.bf16.msra.mxu0 %v1995_v9  ;;  %1537 = vmatpush3.bf16.msra.mxu1 %v1995_v9 }
 0x2c4   :  { %1518 = vmatprep.subr.bf16.mxu0 %v1901_v0  ;;  %1538 = vmatprep.subr.bf16.mxu1 %v1901_v0 }
 0x2c7   :  { %1519 = vmatpush3.bf16.msra.mxu0 %v2007_v10  ;;  %1539 = vmatpush3.bf16.msra.mxu1 %v2007_v10 }
 0x2c8   :  { %1520 = vmatprep.subr.bf16.mxu0 %v1901_v0  ;;  %1540 = vmatprep.subr.bf16.mxu1 %v1901_v0 }
 0x2cb   :  { %1521 = vmatpush3.bf16.msra.mxu0 %v2013_v11  ;;  %1541 = vmatpush3.bf16.msra.mxu1 %v2013_v11 }
 0x2cc   :  { %1522 = vmatprep.subr.bf16.mxu0 %v1901_v0  ;;  %1542 = vmatprep.subr.bf16.mxu1 %v1901_v0 }
 0x2cf   :  { %1523 = vmatpush3.bf16.msra.mxu0 %v2019_v12  ;;  %1543 = vmatpush3.bf16.msra.mxu1 %v2019_v12 }
 0x2d0   :  { %1524 = vmatprep.subr.bf16.mxu0 %v1901_v0  ;;  %1544 = vmatprep.subr.bf16.mxu1 %v1901_v0 }
 0x2d3   :  { %1525 = vmatpush3.bf16.msra.mxu0 %v2027_v13  ;;  %1545 = vmatpush3.bf16.msra.mxu1 %v2027_v13 }
 0x2d4   :  { %1526 = vmatprep.subr.bf16.mxu0 %v1901_v0  ;;  %1546 = vmatprep.subr.bf16.mxu1 %v1901_v0 }
 0x2d7   :  { %1527 = vmatpush3.bf16.msra.mxu0 %v2033_v14  ;;  %1547 = vmatpush3.bf16.msra.mxu1 %v2033_v14 }
 0x2d8   :  { %1552 = vmatprep.subr.bf16.mxu0 %v1901_v0  ;;  %1572 = vmatprep.subr.bf16.mxu1 %v1901_v0 }
 0x38d   :  { %v452_v59 = vpop.f32.mrb[12].mxu0  ;;  %v494_v60 = vpop.f32.mrb[12].mxu1 }
 0x38e   :  { %v453_v61 = vadd.f32 %v2081_v30, %v452_v59  ;;  %v495_v62 = vadd.f32 %v2081_v30, %v494_v60  ;;  %v1490_v63 = vpop.f32.mrb[13].mxu0  ;;  %v1510_v1 = vpop.f32.mrb[13].mxu1 }
 0x38f   :  { %v455_v2 = vpop.f32.mrb[14].mxu0  ;;  %v497_v3 = vpop.f32.mrb[14].mxu1 }
 0x390   :  { %v458_v4 = vmax.f32 %v453_v61, 0.0  ;;  %v500_v5 = vmax.f32 %v495_v62, 0.0  ;;  %v1491_v6 = vpop.f32.mrb[15].mxu0  ;;  %v1511_v15 = vpop.f32.mrb[15].mxu1 }
 0x392   :  { %v501_v16 = vpack.c.bf16 %v458_v4, %v458_v4  ;;  %v543_v17 = vpack.c.bf16 %v500_v5, %v500_v5 }
 0x394   :  { %1529 = vmatmul.mubr.bf16.vlgmr.msra.gmra.mrb[16].mxu0 %v501_v16  ;;  %1549 = vmatmul.mubr.bf16.vlgmr.msra.gmra.mrb[16].mxu1 %v543_v17 }
 0x395   :  { %1553 = vmatpush3.bf16.msra.mxu0 %v1985_v7  ;;  %1573 = vmatpush3.bf16.msra.mxu1 %v1985_v7 }
 0x396   :  { %1554 = vmatprep.subr.bf16.mxu0 %v1901_v0  ;;  %1574 = vmatprep.subr.bf16.mxu1 %v1901_v0 }
 0x397   :  { %1568 = vmatprep.mubr.msk.bf16.mxu0 %vm1902_vm0, %v1901_v0  ;;  %1588 = vmatprep.mubr.msk.bf16.mxu1 %vm1902_vm0, %v1901_v0 }
 0x399   :  { %1555 = vmatpush3.bf16.msra.mxu0 %v1991_v8  ;;  %1575 = vmatpush3.bf16.msra.mxu1 %v1991_v8 }
 0x39a   :  { %1556 = vmatprep.subr.bf16.mxu0 %v1901_v0  ;;  %1576 = vmatprep.subr.bf16.mxu1 %v1901_v0 }
 0x39d   :  { %1557 = vmatpush3.bf16.msra.mxu0 %v1995_v9  ;;  %1577 = vmatpush3.bf16.msra.mxu1 %v1995_v9 }
 0x39e   :  { %1558 = vmatprep.subr.bf16.mxu0 %v1901_v0  ;;  %1578 = vmatprep.subr.bf16.mxu1 %v1901_v0 }
 0x3a1   :  { %1559 = vmatpush3.bf16.msra.mxu0 %v2007_v10  ;;  %1579 = vmatpush3.bf16.msra.mxu1 %v2007_v10 }
 0x3a2   :  { %1560 = vmatprep.subr.bf16.mxu0 %v1901_v0  ;;  %1580 = vmatprep.subr.bf16.mxu1 %v1901_v0 }
 0x3a5   :  { %1561 = vmatpush3.bf16.msra.mxu0 %v2013_v11  ;;  %1581 = vmatpush3.bf16.msra.mxu1 %v2013_v11 }
 0x3a6   :  { %1562 = vmatprep.subr.bf16.mxu0 %v1901_v0  ;;  %1582 = vmatprep.subr.bf16.mxu1 %v1901_v0 }
 0x3a9   :  { %1563 = vmatpush3.bf16.msra.mxu0 %v2019_v12  ;;  %1583 = vmatpush3.bf16.msra.mxu1 %v2019_v12 }
 0x3aa   :  { %1564 = vmatprep.subr.bf16.mxu0 %v1901_v0  ;;  %1584 = vmatprep.subr.bf16.mxu1 %v1901_v0 }
 0x3ad   :  { %1565 = vmatpush3.bf16.msra.mxu0 %v2027_v13  ;;  %1585 = vmatpush3.bf16.msra.mxu1 %v2027_v13 }
 0x3ae   :  { %1566 = vmatprep.subr.bf16.mxu0 %v1901_v0  ;;  %1586 = vmatprep.subr.bf16.mxu1 %v1901_v0 }
 0x3b1   :  { %1567 = vmatpush3.bf16.msra.mxu0 %v2033_v14  ;;  %1587 = vmatpush3.bf16.msra.mxu1 %v2033_v14 }
 0x3b2   :  { %1592 = vmatprep.subr.bf16.mxu0 %v1901_v0  ;;  %1612 = vmatprep.subr.bf16.mxu1 %v1901_v0 }
 0x467   :  { %v536_v18 = vpop.f32.mrb[16].mxu0  ;;  %v578_v19 = vpop.f32.mrb[16].mxu1 }
 0x468   :  { %v537_v20 = vadd.f32 %v2081_v30, %v536_v18  ;;  %v579_v21 = vadd.f32 %v2081_v30, %v578_v19  ;;  %v1530_v22 = vpop.f32.mrb[17].mxu0  ;;  %v1550_v23 = vpop.f32.mrb[17].mxu1 }
 0x469   :  { %v539_v24 = vpop.f32.mrb[18].mxu0  ;;  %v581_v25 = vpop.f32.mrb[18].mxu1 }
 0x46a   :  { %v542_v26 = vmax.f32 %v537_v20, 0.0  ;;  %v584_v27 = vmax.f32 %v579_v21, 0.0  ;;  %v1531_v28 = vpop.f32.mrb[19].mxu0  ;;  %v1551_v29 = vpop.f32.mrb[19].mxu1  ;;  %v1809_v25 = vld [vmem:[#allocation5] sm:$0xff]  }
 0x46b   :  { %v1811_v28 = vld [vmem:[#allocation5 + $0x10] sm:$0xff]   ;;  %v1812_v29 = vld [vmem:[#allocation5 + $0x18] sm:$0xff]  }
 0x46c   :  { %v585_v31 = vpack.c.bf16 %v542_v26, %v542_v26  ;;  %v627_v32 = vpack.c.bf16 %v584_v27, %v584_v27  ;;  %v1810_v27 = vld [vmem:[#allocation5 + $0x8] sm:$0xff]  }
 0x46e   :  { %1569 = vmatmul.mubr.bf16.vlgmr.msra.gmra.mrb[20].mxu0 %v585_v31  ;;  %1589 = vmatmul.mubr.bf16.vlgmr.msra.gmra.mrb[20].mxu1 %v627_v32  ;;  %v1813_v31 = vld [vmem:[#allocation5 + $0x20] sm:$0xff]   ;;  %v1814_v32 = vld [vmem:[#allocation5 + $0x28] sm:$0xff]  }
 0x46f   :  { %1593 = vmatpush3.bf16.msra.mxu0 %v1985_v7  ;;  %1613 = vmatpush3.bf16.msra.mxu1 %v1985_v7 }
 0x470   :  { %1594 = vmatprep.subr.bf16.mxu0 %v1901_v0  ;;  %1614 = vmatprep.subr.bf16.mxu1 %v1901_v0 }
 0x471   :  { %1608 = vmatprep.mubr.msk.bf16.mxu0 %vm1902_vm0, %v1901_v0  ;;  %1628 = vmatprep.mubr.msk.bf16.mxu1 %vm1902_vm0, %v1901_v0 }
 0x473   :  { %1595 = vmatpush3.bf16.msra.mxu0 %v1991_v8  ;;  %1615 = vmatpush3.bf16.msra.mxu1 %v1991_v8 }
 0x474   :  { %1596 = vmatprep.subr.bf16.mxu0 %v1901_v0  ;;  %1616 = vmatprep.subr.bf16.mxu1 %v1901_v0 }
 0x477   :  { %1597 = vmatpush3.bf16.msra.mxu0 %v1995_v9  ;;  %1617 = vmatpush3.bf16.msra.mxu1 %v1995_v9 }
 0x478   :  { %1598 = vmatprep.subr.bf16.mxu0 %v1901_v0  ;;  %1618 = vmatprep.subr.bf16.mxu1 %v1901_v0 }
 0x47b   :  { %1599 = vmatpush3.bf16.msra.mxu0 %v2007_v10  ;;  %1619 = vmatpush3.bf16.msra.mxu1 %v2007_v10 }
 0x47c   :  { %1600 = vmatprep.subr.bf16.mxu0 %v1901_v0  ;;  %1620 = vmatprep.subr.bf16.mxu1 %v1901_v0 }
 0x47f   :  { %1601 = vmatpush3.bf16.msra.mxu0 %v2013_v11  ;;  %1621 = vmatpush3.bf16.msra.mxu1 %v2013_v11 }
 0x480   :  { %1602 = vmatprep.subr.bf16.mxu0 %v1901_v0  ;;  %1622 = vmatprep.subr.bf16.mxu1 %v1901_v0 }
 0x483   :  { %1603 = vmatpush3.bf16.msra.mxu0 %v2019_v12  ;;  %1623 = vmatpush3.bf16.msra.mxu1 %v2019_v12 }
 0x484   :  { %1604 = vmatprep.subr.bf16.mxu0 %v1901_v0  ;;  %1624 = vmatprep.subr.bf16.mxu1 %v1901_v0 }
 0x487   :  { %1605 = vmatpush3.bf16.msra.mxu0 %v2027_v13  ;;  %1625 = vmatpush3.bf16.msra.mxu1 %v2027_v13 }
 0x488   :  { %1606 = vmatprep.subr.bf16.mxu0 %v1901_v0  ;;  %1626 = vmatprep.subr.bf16.mxu1 %v1901_v0 }
 0x48b   :  { %1607 = vmatpush3.bf16.msra.mxu0 %v2033_v14  ;;  %1627 = vmatpush3.bf16.msra.mxu1 %v2033_v14 }
 0x48c   :  { %1632 = vmatprep.subr.bf16.mxu0 %v1901_v0  ;;  %1652 = vmatprep.subr.bf16.mxu1 %v1901_v0 }
 0x541   :  { %v620_v33 = vpop.f32.mrb[20].mxu0  ;;  %v662_v34 = vpop.f32.mrb[20].mxu1 }
 0x542   :  { %v621_v35 = vadd.f32 %v2081_v30, %v620_v33  ;;  %v663_v36 = vadd.f32 %v2081_v30, %v662_v34  ;;  %v1570_v37 = vpop.f32.mrb[21].mxu0  ;;  %v1590_v38 = vpop.f32.mrb[21].mxu1  ;;  %v1815_v33 = vld [vmem:[#allocation5 + $0x30] sm:$0xff]   ;;  %v1816_v34 = vld [vmem:[#allocation5 + $0x38] sm:$0xff]  }
 0x543   :  { %v623_v39 = vpop.f32.mrb[22].mxu0  ;;  %v665_v40 = vpop.f32.mrb[22].mxu1 }
 0x544   :  { %v626_v41 = vmax.f32 %v621_v35, 0.0  ;;  %v668_v42 = vmax.f32 %v663_v36, 0.0  ;;  %v1571_v43 = vpop.f32.mrb[23].mxu0  ;;  %v1591_v44 = vpop.f32.mrb[23].mxu1 }
 0x546   :  { %v669_v45 = vpack.c.bf16 %v626_v41, %v626_v41  ;;  %v711_v46 = vpack.c.bf16 %v668_v42, %v668_v42 }
 0x548   :  { %1609 = vmatmul.mubr.bf16.vlgmr.msra.gmra.mrb[24].mxu0 %v669_v45  ;;  %1629 = vmatmul.mubr.bf16.vlgmr.msra.gmra.mrb[24].mxu1 %v711_v46 }
 0x549   :  { %1633 = vmatpush3.bf16.msra.mxu0 %v1985_v7  ;;  %1653 = vmatpush3.bf16.msra.mxu1 %v1985_v7 }
 0x54a   :  { %1634 = vmatprep.subr.bf16.mxu0 %v1901_v0  ;;  %1654 = vmatprep.subr.bf16.mxu1 %v1901_v0 }
 0x54b   :  { %1648 = vmatprep.mubr.msk.bf16.mxu0 %vm1902_vm0, %v1901_v0  ;;  %1668 = vmatprep.mubr.msk.bf16.mxu1 %vm1902_vm0, %v1901_v0 }
 0x54d   :  { %1635 = vmatpush3.bf16.msra.mxu0 %v1991_v8  ;;  %1655 = vmatpush3.bf16.msra.mxu1 %v1991_v8 }
 0x54e   :  { %1636 = vmatprep.subr.bf16.mxu0 %v1901_v0  ;;  %1656 = vmatprep.subr.bf16.mxu1 %v1901_v0 }
 0x551   :  { %1637 = vmatpush3.bf16.msra.mxu0 %v1995_v9  ;;  %1657 = vmatpush3.bf16.msra.mxu1 %v1995_v9 }
 0x552   :  { %1638 = vmatprep.subr.bf16.mxu0 %v1901_v0  ;;  %1658 = vmatprep.subr.bf16.mxu1 %v1901_v0 }
 0x555   :  { %1639 = vmatpush3.bf16.msra.mxu0 %v2007_v10  ;;  %1659 = vmatpush3.bf16.msra.mxu1 %v2007_v10 }
 0x556   :  { %1640 = vmatprep.subr.bf16.mxu0 %v1901_v0  ;;  %1660 = vmatprep.subr.bf16.mxu1 %v1901_v0 }
 0x559   :  { %1641 = vmatpush3.bf16.msra.mxu0 %v2013_v11  ;;  %1661 = vmatpush3.bf16.msra.mxu1 %v2013_v11 }
 0x55a   :  { %1642 = vmatprep.subr.bf16.mxu0 %v1901_v0  ;;  %1662 = vmatprep.subr.bf16.mxu1 %v1901_v0 }
 0x55d   :  { %1643 = vmatpush3.bf16.msra.mxu0 %v2019_v12  ;;  %1663 = vmatpush3.bf16.msra.mxu1 %v2019_v12 }
 0x55e   :  { %1644 = vmatprep.subr.bf16.mxu0 %v1901_v0  ;;  %1664 = vmatprep.subr.bf16.mxu1 %v1901_v0 }
 0x561   :  { %1645 = vmatpush3.bf16.msra.mxu0 %v2027_v13  ;;  %1665 = vmatpush3.bf16.msra.mxu1 %v2027_v13 }
 0x562   :  { %1646 = vmatprep.subr.bf16.mxu0 %v1901_v0  ;;  %1666 = vmatprep.subr.bf16.mxu1 %v1901_v0 }
 0x565   :  { %1647 = vmatpush3.bf16.msra.mxu0 %v2033_v14  ;;  %1667 = vmatpush3.bf16.msra.mxu1 %v2033_v14 }
 0x566   :  { %1672 = vmatprep.subr.bf16.mxu0 %v1901_v0  ;;  %1692 = vmatprep.subr.bf16.mxu1 %v1901_v0 }
 0x61b   :  { %v704_v47 = vpop.f32.mrb[24].mxu0  ;;  %v746_v48 = vpop.f32.mrb[24].mxu1 }
 0x61c   :  { %v705_v49 = vadd.f32 %v2081_v30, %v704_v47  ;;  %v747_v50 = vadd.f32 %v2081_v30, %v746_v48  ;;  %v1610_v51 = vpop.f32.mrb[25].mxu0  ;;  %v1630_v52 = vpop.f32.mrb[25].mxu1 }
 0x61d   :  { %v707_v53 = vpop.f32.mrb[26].mxu0  ;;  %v749_v54 = vpop.f32.mrb[26].mxu1 }
 0x61e   :  { %v710_v55 = vmax.f32 %v705_v49, 0.0  ;;  %v752_v56 = vmax.f32 %v747_v50, 0.0  ;;  %v1611_v57 = vpop.f32.mrb[27].mxu0  ;;  %v1631_v58 = vpop.f32.mrb[27].mxu1 }
 0x620   :  { %v753_v59 = vpack.c.bf16 %v710_v55, %v710_v55  ;;  %v795_v60 = vpack.c.bf16 %v752_v56, %v752_v56 }
 0x622   :  { %1649 = vmatmul.mubr.bf16.vlgmr.msra.gmra.mrb[28].mxu0 %v753_v59  ;;  %1669 = vmatmul.mubr.bf16.vlgmr.msra.gmra.mrb[28].mxu1 %v795_v60 }
 0x623   :  { %1673 = vmatpush3.bf16.msra.mxu0 %v1985_v7  ;;  %1693 = vmatpush3.bf16.msra.mxu1 %v1985_v7 }
 0x624   :  { %1674 = vmatprep.subr.bf16.mxu0 %v1901_v0  ;;  %1694 = vmatprep.subr.bf16.mxu1 %v1901_v0 }
 0x625   :  { %1688 = vmatprep.mubr.msk.bf16.mxu0 %vm1902_vm0, %v1901_v0  ;;  %1708 = vmatprep.mubr.msk.bf16.mxu1 %vm1902_vm0, %v1901_v0 }
 0x627   :  { %1675 = vmatpush3.bf16.msra.mxu0 %v1991_v8  ;;  %1695 = vmatpush3.bf16.msra.mxu1 %v1991_v8 }
 0x628   :  { %1676 = vmatprep.subr.bf16.mxu0 %v1901_v0  ;;  %1696 = vmatprep.subr.bf16.mxu1 %v1901_v0 }
 0x62b   :  { %1677 = vmatpush3.bf16.msra.mxu0 %v1995_v9  ;;  %1697 = vmatpush3.bf16.msra.mxu1 %v1995_v9 }
 0x62c   :  { %1678 = vmatprep.subr.bf16.mxu0 %v1901_v0  ;;  %1698 = vmatprep.subr.bf16.mxu1 %v1901_v0 }
 0x62f   :  { %1679 = vmatpush3.bf16.msra.mxu0 %v2007_v10  ;;  %1699 = vmatpush3.bf16.msra.mxu1 %v2007_v10 }
 0x630   :  { %1680 = vmatprep.subr.bf16.mxu0 %v1901_v0  ;;  %1700 = vmatprep.subr.bf16.mxu1 %v1901_v0 }
 0x633   :  { %1681 = vmatpush3.bf16.msra.mxu0 %v2013_v11  ;;  %1701 = vmatpush3.bf16.msra.mxu1 %v2013_v11 }
 0x634   :  { %1682 = vmatprep.subr.bf16.mxu0 %v1901_v0  ;;  %1702 = vmatprep.subr.bf16.mxu1 %v1901_v0 }
 0x637   :  { %1683 = vmatpush3.bf16.msra.mxu0 %v2019_v12  ;;  %1703 = vmatpush3.bf16.msra.mxu1 %v2019_v12 }
 0x638   :  { %1684 = vmatprep.subr.bf16.mxu0 %v1901_v0  ;;  %1704 = vmatprep.subr.bf16.mxu1 %v1901_v0 }
 0x63b   :  { %1685 = vmatpush3.bf16.msra.mxu0 %v2027_v13  ;;  %1705 = vmatpush3.bf16.msra.mxu1 %v2027_v13 }
 0x63c   :  { %1686 = vmatprep.subr.bf16.mxu0 %v1901_v0  ;;  %1706 = vmatprep.subr.bf16.mxu1 %v1901_v0 }
 0x63f   :  { %1687 = vmatpush3.bf16.msra.mxu0 %v2033_v14  ;;  %1707 = vmatpush3.bf16.msra.mxu1 %v2033_v14 }
 0x640   :  { %1712 = vmatprep.subr.bf16.mxu0 %v1901_v0  ;;  %1732 = vmatprep.subr.bf16.mxu1 %v1901_v0 }
 0x6f5   :  { %v788_v61 = vpop.f32.mrb[28].mxu0  ;;  %v830_v62 = vpop.f32.mrb[28].mxu1 }
 0x6f6   :  { %v789_v63 = vadd.f32 %v2081_v30, %v788_v61  ;;  %v831_v1 = vadd.f32 %v2081_v30, %v830_v62  ;;  %v1650_v2 = vpop.f32.mrb[29].mxu0  ;;  %v1670_v3 = vpop.f32.mrb[29].mxu1 }
 0x6f7   :  { %v791_v4 = vpop.f32.mrb[30].mxu0  ;;  %v833_v5 = vpop.f32.mrb[30].mxu1 }
 0x6f8   :  { %v794_v6 = vmax.f32 %v789_v63, 0.0  ;;  %v836_v15 = vmax.f32 %v831_v1, 0.0  ;;  %v1651_v16 = vpop.f32.mrb[31].mxu0  ;;  %v1671_v17 = vpop.f32.mrb[31].mxu1 }
 0x6fa   :  { %v837_v18 = vpack.c.bf16 %v794_v6, %v794_v6  ;;  %v879_v19 = vpack.c.bf16 %v836_v15, %v836_v15 }
 0x6fc   :  { %1689 = vmatmul.mubr.bf16.vlgmr.msra.gmra.mrb[32].mxu0 %v837_v18  ;;  %1709 = vmatmul.mubr.bf16.vlgmr.msra.gmra.mrb[32].mxu1 %v879_v19 }
 0x6fd   :  { %1713 = vmatpush3.bf16.msra.mxu0 %v1985_v7  ;;  %1733 = vmatpush3.bf16.msra.mxu1 %v1985_v7 }
 0x6fe   :  { %1714 = vmatprep.subr.bf16.mxu0 %v1901_v0  ;;  %1734 = vmatprep.subr.bf16.mxu1 %v1901_v0 }
 0x6ff   :  { %1728 = vmatprep.mubr.msk.bf16.mxu0 %vm1902_vm0, %v1901_v0  ;;  %1748 = vmatprep.mubr.msk.bf16.mxu1 %vm1902_vm0, %v1901_v0 }
 0x701   :  { %1715 = vmatpush3.bf16.msra.mxu0 %v1991_v8  ;;  %1735 = vmatpush3.bf16.msra.mxu1 %v1991_v8 }
 0x702   :  { %1716 = vmatprep.subr.bf16.mxu0 %v1901_v0  ;;  %1736 = vmatprep.subr.bf16.mxu1 %v1901_v0 }
 0x705   :  { %1717 = vmatpush3.bf16.msra.mxu0 %v1995_v9  ;;  %1737 = vmatpush3.bf16.msra.mxu1 %v1995_v9 }
 0x706   :  { %1718 = vmatprep.subr.bf16.mxu0 %v1901_v0  ;;  %1738 = vmatprep.subr.bf16.mxu1 %v1901_v0 }
 0x709   :  { %1719 = vmatpush3.bf16.msra.mxu0 %v2007_v10  ;;  %1739 = vmatpush3.bf16.msra.mxu1 %v2007_v10 }
 0x70a   :  { %1720 = vmatprep.subr.bf16.mxu0 %v1901_v0  ;;  %1740 = vmatprep.subr.bf16.mxu1 %v1901_v0 }
 0x70d   :  { %1721 = vmatpush3.bf16.msra.mxu0 %v2013_v11  ;;  %1741 = vmatpush3.bf16.msra.mxu1 %v2013_v11 }
 0x70e   :  { %1722 = vmatprep.subr.bf16.mxu0 %v1901_v0  ;;  %1742 = vmatprep.subr.bf16.mxu1 %v1901_v0 }
 0x711   :  { %1723 = vmatpush3.bf16.msra.mxu0 %v2019_v12  ;;  %1743 = vmatpush3.bf16.msra.mxu1 %v2019_v12 }
 0x712   :  { %1724 = vmatprep.subr.bf16.mxu0 %v1901_v0  ;;  %1744 = vmatprep.subr.bf16.mxu1 %v1901_v0 }
 0x715   :  { %1725 = vmatpush3.bf16.msra.mxu0 %v2027_v13  ;;  %1745 = vmatpush3.bf16.msra.mxu1 %v2027_v13 }
 0x716   :  { %1726 = vmatprep.subr.bf16.mxu0 %v1901_v0  ;;  %1746 = vmatprep.subr.bf16.mxu1 %v1901_v0 }
 0x719   :  { %1727 = vmatpush3.bf16.msra.mxu0 %v2033_v14  ;;  %1747 = vmatpush3.bf16.msra.mxu1 %v2033_v14 }
 0x71a   :  { %1752 = vmatprep.subr.bf16.mxu0 %v1901_v0  ;;  %1772 = vmatprep.subr.bf16.mxu1 %v1901_v0 }
 0x7cf   :  { %v872_v7 = vpop.f32.mrb[32].mxu0  ;;  %v914_v8 = vpop.f32.mrb[32].mxu1 }
 0x7d0   :  { %v873_v9 = vadd.f32 %v2081_v30, %v872_v7  ;;  %v915_v10 = vadd.f32 %v2081_v30, %v914_v8  ;;  %v1690_v11 = vpop.f32.mrb[33].mxu0  ;;  %v1710_v12 = vpop.f32.mrb[33].mxu1 }
 0x7d1   :  { %v875_v13 = vpop.f32.mrb[34].mxu0  ;;  %v917_v20 = vpop.f32.mrb[34].mxu1 }
 0x7d2   :  { %v878_v21 = vmax.f32 %v873_v9, 0.0  ;;  %v920_v22 = vmax.f32 %v915_v10, 0.0  ;;  %v1691_v23 = vpop.f32.mrb[35].mxu0  ;;  %v1711_v24 = vpop.f32.mrb[35].mxu1 }
 0x7d4   :  { %v921_v14 = vpack.c.bf16 %v878_v21, %v878_v21  ;;  %v963_v26 = vpack.c.bf16 %v920_v22, %v920_v22 }
 0x7d6   :  { %1729 = vmatmul.mubr.bf16.vlgmr.msra.gmra.mrb[36].mxu0 %v921_v14  ;;  %1749 = vmatmul.mubr.bf16.vlgmr.msra.gmra.mrb[36].mxu1 %v963_v26 }
 0x7d7   :  { %1753 = vmatpush3.bf16.msra.mxu0 %v1809_v25  ;;  %1773 = vmatpush3.bf16.msra.mxu1 %v1809_v25 }
 0x7d8   :  { %1754 = vmatprep.subr.bf16.mxu0 %v1901_v0  ;;  %1774 = vmatprep.subr.bf16.mxu1 %v1901_v0 }
 0x7d9   :  { %1768 = vmatprep.mubr.msk.bf16.mxu0 %vm1902_vm0, %v1901_v0  ;;  %1788 = vmatprep.mubr.msk.bf16.mxu1 %vm1902_vm0, %v1901_v0 }
 0x7db   :  { %1755 = vmatpush3.bf16.msra.mxu0 %v1810_v27  ;;  %1775 = vmatpush3.bf16.msra.mxu1 %v1810_v27 }
 0x7dc   :  { %1756 = vmatprep.subr.bf16.mxu0 %v1901_v0  ;;  %1776 = vmatprep.subr.bf16.mxu1 %v1901_v0 }
 0x7df   :  { %1757 = vmatpush3.bf16.msra.mxu0 %v1811_v28  ;;  %1777 = vmatpush3.bf16.msra.mxu1 %v1811_v28 }
 0x7e0   :  { %1758 = vmatprep.subr.bf16.mxu0 %v1901_v0  ;;  %1778 = vmatprep.subr.bf16.mxu1 %v1901_v0 }
 0x7e3   :  { %1759 = vmatpush3.bf16.msra.mxu0 %v1812_v29  ;;  %1779 = vmatpush3.bf16.msra.mxu1 %v1812_v29 }
 0x7e4   :  { %1760 = vmatprep.subr.bf16.mxu0 %v1901_v0  ;;  %1780 = vmatprep.subr.bf16.mxu1 %v1901_v0 }
 0x7e7   :  { %1761 = vmatpush3.bf16.msra.mxu0 %v1813_v31  ;;  %1781 = vmatpush3.bf16.msra.mxu1 %v1813_v31 }
 0x7e8   :  { %1762 = vmatprep.subr.bf16.mxu0 %v1901_v0  ;;  %1782 = vmatprep.subr.bf16.mxu1 %v1901_v0 }
 0x7eb   :  { %1763 = vmatpush3.bf16.msra.mxu0 %v1814_v32  ;;  %1783 = vmatpush3.bf16.msra.mxu1 %v1814_v32 }
 0x7ec   :  { %1764 = vmatprep.subr.bf16.mxu0 %v1901_v0  ;;  %1784 = vmatprep.subr.bf16.mxu1 %v1901_v0 }
 0x7ef   :  { %1765 = vmatpush3.bf16.msra.mxu0 %v1815_v33  ;;  %1785 = vmatpush3.bf16.msra.mxu1 %v1815_v33 }
 0x7f0   :  { %1766 = vmatprep.subr.bf16.mxu0 %v1901_v0  ;;  %1786 = vmatprep.subr.bf16.mxu1 %v1901_v0  ;;  %v1185_v0 = vld [vmem:[%s2392_s6] ss:$0 sm:$0xff]  ;;  %s1903_s6 = smov [#allocation7]  }
 0x7f1   :  { %s1160_s10 = sshll.u32 %s1903_s6, 4  ;;  %s1161_s10 = int_to_ptr.vmem [resolvable:$true] %s1160_s10 }
 0x7f2   :  { %s1869_s11 = scalar_lea.vmem %s1161_s10, 256  ;;  %p1874_p3 = scmp.lt.s32.totalorder %s1161_s10, %s1161_s10 }
 0x7f3   :  { %1767 = vmatpush3.bf16.msra.mxu0 %v1816_v34  ;;  %1787 = vmatpush3.bf16.msra.mxu1 %v1816_v34  ;;  %p1870_p2 = scmp.ne.s32.totalorder %s1161_s10, %s1869_s11  ;;  %p1875_p4 = scmp.lt.s32.totalorder %s1869_s11, %s1869_s11 }
 0x7f5   :  { %p1876_p5 = por %p1875_p4, %p1874_p3 }
 0x7f7   :  { %p1877_p6 = pnand %p1876_p5, %p1870_p2 }
 0x8a9   :  { %v956_v35 = vpop.f32.mrb[36].mxu0  ;;  %v998_v36 = vpop.f32.mrb[36].mxu1 }
 0x8aa   :  { %v957_v37 = vadd.f32 %v2081_v30, %v956_v35  ;;  %v999_v38 = vadd.f32 %v2081_v30, %v998_v36  ;;  %v1730_v39 = vpop.f32.mrb[37].mxu0  ;;  %v1750_v40 = vpop.f32.mrb[37].mxu1 }
 0x8ab   :  { %v959_v41 = vpop.f32.mrb[38].mxu0  ;;  %v1001_v42 = vpop.f32.mrb[38].mxu1 }
 0x8ac   :  { %v962_v43 = vmax.f32 %v957_v37, 0.0  ;;  %v1004_v44 = vmax.f32 %v999_v38, 0.0  ;;  %v1731_v45 = vpop.f32.mrb[39].mxu0  ;;  %v1751_v46 = vpop.f32.mrb[39].mxu1 }
 0x8ae   :  { %v1005_v47 = vpack.c.bf16 %v962_v43, %v962_v43  ;;  %v1107_v48 = vpack.c.bf16 %v1004_v44, %v1004_v44 }
 0x8b0   :  { %1769 = vmatmul.mubr.bf16.vlgmr.msra.gmra.mrb[40].mxu0 %v1005_v47  ;;  %1789 = vmatmul.mubr.bf16.vlgmr.msra.gmra.mrb[40].mxu1 %v1107_v48 }
 0x983   :  { %v1094_v49 = vpop.f32.mrb[40].mxu0  ;;  %v1142_v50 = vpop.f32.mrb[40].mxu1 }
 0x984   :  { %v1095_v51 = vadd.f32 %v1185_v0, %v1094_v49  ;;  %v1143_v30 = vadd.f32 %v1185_v0, %v1142_v50  ;;  %v1770_v52 = vpop.f32.mrb[41].mxu0  ;;  %v1790_v53 = vpop.f32.mrb[41].mxu1 }
 0x985   :  { %v1097_v54 = vpop.f32.mrb[42].mxu0  ;;  %v1145_v55 = vpop.f32.mrb[42].mxu1 }
 0x986   :  { %v1194_v56 = vmul.f32 -1.442695, %v1095_v51  ;;  %v1195_v57 = vmul.f32 -1.442695, %v1143_v30  ;;  %v1771_v58 = vpop.f32.mrb[43].mxu0  ;;  %v1791_v59 = vpop.f32.mrb[43].mxu1 }
 0x988   :  { %1817 = vpow2.f32 %v1194_v56 }
 0x989   :  { %1819 = vpow2.f32 %v1195_v57 }
 0x992   :  { %v1818_v60 = vpop.eup %1817 }
 0x993   :  { %v1820_v61 = vpop.eup %1819  ;;  %v1103_v62 = vadd.f32 1.0, %v1818_v60 }
 0x994   :  { %v1151_v63 = vadd.f32 1.0, %v1820_v61 }
 0x995   :  { %1821 = vrcp.f32 %v1103_v62 }
 0x996   :  { %1823 = vrcp.f32 %v1151_v63 }
 0x99f   :  { %v1822_v1 = vpop.eup %1821 }
 0x9a0   :  { %v1824_v2 = vpop.eup %1823  ;;  %1106 = vst [vmem:[#allocation7] sm:$0xff] %v1822_v1 }
 0x9a1   :  { %1154 = vst [vmem:[#allocation7 + $0x8] sm:$0xff] %v1824_v2 }
 0x9a2   :  { %1880 = shalt.err (!%p1877_p6)
}
 0x9a3   :  { %s1881_s14 = scalar_lea.hbm %s2393_s7, 256 }
 0x9a4   :  { %p1882_p7 = scmp.ne.s32.totalorder %s2393_s7, %s1881_s14  ;;  %p1885_p8 = scmp.lt.u32.totalorder %s1881_s14, %s2393_s7 }
 0x9a6   :  { %p1887_p9 = pnand %p1885_p8, %p1882_p7 }
 0x9a8   :  { %1890 = shalt.err (!%p1887_p9)
}
 0x9a9   :  { %s1904_s19 = smov 128   ;;  %s1905_s20 = smov 8  }
 0x9aa   :  { %1166 = dma.vmem_to_hbm [thread:$0]  %s1161_s10, 256, %s2393_s7, [#allocation4], %s1904_s19, %s1904_s19, %s1905_s20  }
 0x9ab   :  { %1895 = dma.done.wait [#allocation4], 256  }
 0x9ac   :  { %1896 = vsyncadd [#allocation4], 4294967040 }
 0x9ad   :  { %1170 = vsyncpa [#allocation3], 1 }
 0x9ae   :  { %1171 = vsyncpa [#allocation6], 1 }
 0x9af   :  { %1172 = vsyncpa [#allocation4], 1 }

</bundles_post_ra>
